<compile_context>
chip_gen: v5e
topology: v5e:2x2
jax: 0.10.0
libtpu: 0.0.40
codegen_flags: <defaults>
</compile_context>

<pallas_src>
import functools

import jax
import jax.numpy as jnp
from jax import lax
from jax.experimental import pallas as pl
from jax.experimental.pallas import tpu as pltpu

_LANE = 128
_SUBLANE = 8


def _bce_sum_kernel(r_ref, t_ref, out_ref, acc_ref, *, rows, tile_rows, inner,
                    exact_cover):
    """Accumulates sum of  t*log(r) + (1-t)*log(1-r)  (positive sign) per split."""
    c = pl.program_id(0)
    i = pl.program_id(1)

    @pl.when(i == 0)
    def _():
        acc_ref[...] = jnp.zeros_like(acc_ref)

    r = r_ref[...].astype(jnp.float32)
    t = t_ref[...].astype(jnp.float32)

    # PyTorch F.binary_cross_entropy clamps the log terms at -100.
    log_r = jnp.maximum(jnp.log(r), -100.0)
    log_1mr = jnp.maximum(jnp.log(1.0 - r), -100.0)
    # = t*log(r) + (1-t)*log(1-r), with one fewer subtract/multiply and no
    # per-element negation (negated once outside the kernel).
    s = log_1mr + t * (log_r - log_1mr)

    def _reduce(v):
        # Sublane-tile-aligned reshape (stays within (8,128) tiles, so it should
        # fuse with the elementwise chain) + VPU adds into a single vreg.
        if tile_rows % _SUBLANE == 0:
            return jnp.sum(v.reshape(tile_rows // _SUBLANE, _SUBLANE, _LANE), axis=0)
        return v  # tiny-input case: acc_ref has shape (tile_rows, 128)

    if exact_cover:
        # Statically known: every tile is fully valid -> no masking anywhere.
        acc_ref[...] += _reduce(s)
    else:
        row_start = (c * inner + i) * tile_rows  # logical (unclamped) start row
        is_full = row_start + tile_rows <= rows

        @pl.when(is_full)
        def _():
            acc_ref[...] += _reduce(s)

        @pl.when(jnp.logical_not(is_full))
        def _():
            # Partial / overshoot tile: zero rows past the end of the data.
            ridx = lax.broadcasted_iota(jnp.int32, (tile_rows, _LANE), 0)
            valid = ridx < (rows - row_start)
            acc_ref[...] += _reduce(jnp.where(valid, s, 0.0))

    @pl.when(i == pl.num_programs(1) - 1)
    def _():
        # Per-split partial row; final cross-lane reduce happens outside.
        out_ref[...] = jnp.sum(acc_ref[...], axis=0, keepdims=True)


def ae_loss(recons, inputs, *, tile_rows=4096, num_splits=2):
    """Returns {'loss': scalar, 'reconstruct': scalar} matching AELoss.forward.

    Pass `recons`/`inputs` in their native dtype (e.g. bf16) — do NOT pre-cast
    to f32; the kernel upcasts per tile and the loss is accumulated in f32.
    """
    assert recons.shape == inputs.shape
    total = recons.size
    assert total > 0

    r_flat = recons.reshape(-1)
    t_flat = inputs.reshape(-1)

    # Only non-128-divisible totals need (tiny, <128-element) ones-padding;
    # (recons=1, target=1) contributes exactly 0 to the BCE sum.  128-divisible
    # totals take the zero-copy path (reshape of a contiguous buffer).
    pad = (-total) % _LANE
    if pad:
        r_flat = jnp.concatenate([r_flat, jnp.ones((pad,), r_flat.dtype)])
        t_flat = jnp.concatenate([t_flat, jnp.ones((pad,), t_flat.dtype)])
    rows = (total + pad) // _LANE

    # Tile sizing: multiple of 8 sublanes, never bigger than the data.
    if rows >= _SUBLANE:
        tile_rows = max(_SUBLANE, min(int(tile_rows), (rows // _SUBLANE) * _SUBLANE))
        tile_rows = (tile_rows // _SUBLANE) * _SUBLANE
    else:
        tile_rows = rows  # block equals full array dim -> allowed
    acc_rows = _SUBLANE if tile_rows % _SUBLANE == 0 else tile_rows

    num_blocks = -(-rows // tile_rows)
    num_splits = max(1, min(int(num_splits), num_blocks))
    inner = -(-num_blocks // num_splits)
    last_block = num_blocks - 1
    exact_cover = num_splits * inner * tile_rows == rows

    r2 = r_flat.reshape(rows, _LANE)
    t2 = t_flat.reshape(rows, _LANE)

    def in_map(c, i):
        # Clamp so overshoot steps (when num_splits*inner > num_blocks) re-read
        # the last real block; their logical row range is fully masked in-kernel.
        return (jnp.minimum(c * inner + i, last_block), 0)

    kernel = functools.partial(
        _bce_sum_kernel,
        rows=rows, tile_rows=tile_rows, inner=inner, exact_cover=exact_cover)

    partials = pl.pallas_call(
        kernel,
        out_shape=jax.ShapeDtypeStruct((num_splits, _LANE), jnp.float32),
        grid_spec=pltpu.PrefetchScalarGridSpec(
            num_scalar_prefetch=0,
            grid=(num_splits, inner),
            in_specs=[
                pl.BlockSpec((tile_rows, _LANE), in_map),
                pl.BlockSpec((tile_rows, _LANE), in_map),
            ],
            out_specs=pl.BlockSpec((1, _LANE), lambda c, i: (c, 0)),
            scratch_shapes=[pltpu.VMEM((acc_rows, _LANE), jnp.float32)],
        ),
        compiler_params=pltpu.CompilerParams(
            # Leading axis splits the reduction across TensorCores on v7x; the
            # trailing axis is the sequential reduction.
            dimension_semantics=("parallel", "arbitrary"),
            # Explicit limit: 2 inputs x 2 buffers x 2 MiB blocks (+ temps) must
            # not trip v5e's 16 MiB default scoped VMEM; well under v7x's 64 MiB.
            vmem_limit_bytes=40 << 20,
        ),
    )(r2, t2)

    # Single cross-lane reduce, sign flip and divide-by-N outside the hot loop.
    loss = -jnp.sum(partials) / jnp.float32(total)
    return {"loss": loss, "reconstruct": loss}


def _reference(recons, inputs):
    r = recons.astype(jnp.float32)
    t = inputs.astype(jnp.float32)
    log_r = jnp.maximum(jnp.log(r), -100.0)
    log_1mr = jnp.maximum(jnp.log(1.0 - r), -100.0)
    return jnp.mean(-(t * log_r + (1.0 - t) * log_1mr))


if __name__ == "__main__":
    key = jax.random.PRNGKey(0)
    ks = jax.random.split(key, 8)

    def check(recons, inputs, **kw):
        out = ae_loss(recons, inputs, **kw)
        jax.block_until_ready(out["loss"])
        ref = _reference(recons, inputs)
        assert jnp.allclose(out["loss"], ref, rtol=1e-5, atol=1e-6), (out["loss"], ref)
        assert jnp.allclose(out["reconstruct"], ref, rtol=1e-5, atol=1e-6)

    # 1) NCHW, 128-divisible total -> fully zero-copy path, single full tile.
    s1 = (2, 4, 16, 16)
    check(jax.nn.sigmoid(jax.random.normal(ks[0], s1, dtype=jnp.float32)),
          jax.random.uniform(ks[1], s1, dtype=jnp.float32))

    # 2) Awkward shape (total % 128 != 0) -> minimal (<128 elem) ones-padding.
    s2 = (2, 3, 7, 5)
    check(jax.nn.sigmoid(jax.random.normal(ks[2], s2, dtype=jnp.float32)),
          jax.random.uniform(ks[3], s2, dtype=jnp.float32))

    # 3) 128-divisible but ragged rows (30 rows) -> in-kernel masked partial
    #    tile + 2-way split, no padding copy.
    s3 = (3, 5, 16, 16)
    check(jax.nn.sigmoid(jax.random.normal(ks[4], s3, dtype=jnp.float32)),
          jax.random.uniform(ks[5], s3, dtype=jnp.float32))

    # 4) Uneven split (3 blocks over 2 splits) -> exercises the clamped,
    #    fully-masked overshoot step.
    s4 = (2, 3, 16, 32)  # 3072 elems = 24 rows; tile_rows=8 -> 3 blocks
    check(jax.nn.sigmoid(jax.random.normal(ks[6], s4, dtype=jnp.float32)),
          jax.random.uniform(ks[7], s4, dtype=jnp.float32),
          tile_rows=8, num_splits=2)

    print("KERNEL_OK")
</pallas_src>

<mosaic_0001>
module attributes {stable_mosaic.version = 11 : i64} {
  func.func @_bce_sum_kernel(%arg0: i32, %arg1: i32, %arg2: memref<16x128xf32, #tpu.memory_space<vmem>>, %arg3: memref<16x128xf32, #tpu.memory_space<vmem>>, %arg4: memref<1x128xf32, #tpu.memory_space<vmem>>, %arg5: memref<8x128xf32, #tpu.memory_space<vmem>>) attributes {dimension_semantics = [#tpu.dimension_semantics<parallel>, #tpu.dimension_semantics<arbitrary>], iteration_bounds = array<i64: 1, 1>, scalar_prefetch = 0 : i64, scratch_operands = 1 : i64, tpu.core_type = #tpu.core_type<tc>, window_params = [{transform_indices = @transform_0, window_bounds = array<i64: 16, 128>}, {transform_indices = @transform_1, window_bounds = array<i64: 16, 128>}, {transform_indices = @transform_2, window_bounds = array<i64: 1, 128>}]} {
    %c0_i32 = arith.constant 0 : i32
    %0 = arith.cmpi eq, %arg1, %c0_i32 : i32
    %1 = arith.extui %0 : i1 to i32
    %c0_i32_0 = arith.constant 0 : i32
    %2 = arith.cmpi ne, %1, %c0_i32_0 : i32
    scf.if %2 {
      %cst_13 = arith.constant 0.000000e+00 : f32
      %24 = vector.broadcast %cst_13 : f32 to vector<8x128xf32>
      %c0_14 = arith.constant 0 : index
      %c0_15 = arith.constant 0 : index
      %25 = vector.load %arg5[%c0_14, %c0_15] : memref<8x128xf32, #tpu.memory_space<vmem>>, vector<8x128xf32>
      tpu.vector_store %arg5[%c0_14, %c0_15], %24 {strides = array<i32>} : memref<8x128xf32, #tpu.memory_space<vmem>>, vector<8x128xf32>,
    } else {
    }
    %c0 = arith.constant 0 : index
    %c0_1 = arith.constant 0 : index
    %3 = vector.load %arg2[%c0, %c0_1] : memref<16x128xf32, #tpu.memory_space<vmem>>, vector<16x128xf32>
    %c0_2 = arith.constant 0 : index
    %c0_3 = arith.constant 0 : index
    %4 = vector.load %arg3[%c0_2, %c0_3] : memref<16x128xf32, #tpu.memory_space<vmem>>, vector<16x128xf32>
    %5 = math.log %3 : vector<16x128xf32>
    %cst = arith.constant -1.000000e+02 : f32
    %6 = vector.broadcast %cst : f32 to vector<16x128xf32>
    %7 = arith.maximumf %5, %6 : vector<16x128xf32>
    %cst_4 = arith.constant 1.000000e+00 : f32
    %8 = vector.broadcast %cst_4 : f32 to vector<16x128xf32>
    %9 = arith.subf %8, %3 : vector<16x128xf32>
    %10 = math.log %9 : vector<16x128xf32>
    %cst_5 = arith.constant -1.000000e+02 : f32
    %11 = vector.broadcast %cst_5 : f32 to vector<16x128xf32>
    %12 = arith.maximumf %10, %11 : vector<16x128xf32>
    %13 = arith.subf %7, %12 : vector<16x128xf32>
    %14 = arith.mulf %4, %13 : vector<16x128xf32>
    %15 = arith.addf %12, %14 : vector<16x128xf32>
    %c0_6 = arith.constant 0 : index
    %c0_7 = arith.constant 0 : index
    %16 = vector.load %arg5[%c0_6, %c0_7] : memref<8x128xf32, #tpu.memory_space<vmem>>, vector<8x128xf32>
    %17 = vector.shape_cast %15 : vector<16x128xf32> to vector<2x8x128xf32>
    %cst_8 = arith.constant dense<0.000000e+00> : vector<8x128xf32>
    %18 = vector.multi_reduction <add>, %17, %cst_8 [0] : vector<2x8x128xf32> to vector<8x128xf32>
    %19 = arith.addf %16, %18 : vector<8x128xf32>
    %c0_9 = arith.constant 0 : index
    %c0_10 = arith.constant 0 : index
    %20 = vector.load %arg5[%c0_9, %c0_10] : memref<8x128xf32, #tpu.memory_space<vmem>>, vector<8x128xf32>
    tpu.vector_store %arg5[%c0_9, %c0_10], %19 {strides = array<i32>} : memref<8x128xf32, #tpu.memory_space<vmem>>, vector<8x128xf32>,
    %c0_i32_11 = arith.constant 0 : i32
    %21 = arith.cmpi eq, %arg1, %c0_i32_11 : i32
    %22 = arith.extui %21 : i1 to i32
    %c0_i32_12 = arith.constant 0 : i32
    %23 = arith.cmpi ne, %22, %c0_i32_12 : i32
    scf.if %23 {
      %c0_13 = arith.constant 0 : index
      %c0_14 = arith.constant 0 : index
      %24 = vector.load %arg5[%c0_13, %c0_14] : memref<8x128xf32, #tpu.memory_space<vmem>>, vector<8x128xf32>
      %cst_15 = arith.constant dense<0.000000e+00> : vector<128xf32>
      %25 = vector.multi_reduction <add>, %24, %cst_15 [0] : vector<8x128xf32> to vector<128xf32>
      %26 = vector.shape_cast %25 : vector<128xf32> to vector<1x128xf32>
      %c0_16 = arith.constant 0 : index
      %c0_17 = arith.constant 0 : index
      %27 = vector.load %arg4[%c0_16, %c0_17] : memref<1x128xf32, #tpu.memory_space<vmem>>, vector<1x128xf32>
      tpu.vector_store %arg4[%c0_16, %c0_17], %26 {strides = array<i32>} : memref<1x128xf32, #tpu.memory_space<vmem>>, vector<1x128xf32>,
    } else {
    }
    return
  }
  func.func @transform_0(%arg0: i32, %arg1: i32) -> (i32, i32) {
    %c1_i32 = arith.constant 1 : i32
    %0 = arith.muli %arg0, %c1_i32 : i32
    %1 = arith.addi %0, %arg1 : i32
    %c0_i32 = arith.constant 0 : i32
    %2 = arith.minsi %1, %c0_i32 : i32
    %c0_i32_0 = arith.constant 0 : i32
    %c0_i32_1 = arith.constant 0 : i32
    return %2, %c0_i32_0 : i32, i32
  }
  func.func @transform_1(%arg0: i32, %arg1: i32) -> (i32, i32) {
    %c1_i32 = arith.constant 1 : i32
    %0 = arith.muli %arg0, %c1_i32 : i32
    %1 = arith.addi %0, %arg1 : i32
    %c0_i32 = arith.constant 0 : i32
    %2 = arith.minsi %1, %c0_i32 : i32
    %c0_i32_0 = arith.constant 0 : i32
    %c0_i32_1 = arith.constant 0 : i32
    return %2, %c0_i32_0 : i32, i32
  }
  func.func @transform_2(%arg0: i32, %arg1: i32) -> (i32, i32) {
    %c0_i32 = arith.constant 0 : i32
    %c0_i32_0 = arith.constant 0 : i32
    return %arg0, %c0_i32 : i32, i32
  }
}

</mosaic_0001>

<bundles_post_ra>
// kernel: tpu_custom_call.1
= control target key start
LH: loop header
LB: loop body
LE: loop exit
PB: predicated region body
PF: predicated region fallthrough
CT: control target
= control target key end

     0   :  { %7 = vsyncpa [#allocation4], 0  ;;  %s250_s0 = inlined_call_operand.hbm [shape: f32[16,128], index: 0, kind: input, shape index: {}]   ;;  %s251_s1 = inlined_call_operand.hbm [shape: f32[16,128], index: 1, kind: input, shape index: {}]   ;;  %s252_s2 = inlined_call_operand.hbm [shape: f32[1,128], index: 2, kind: output, shape index: {}]  }
   0x1   :  { %8 = vsyncpa [#allocation7], 0 }
   0x2   :  { %9 = vsyncpa [#allocation5], 0  ;;  %s20_s11 = sshll.u32 %s250_s0, 4  ;;  %s221_s12 = smov [#allocation3]   ;;  %s21_s11 = int_to_ptr.hbm [resolvable:$true] %s20_s11 }
   0x3   :  { %s22_s13 = sshll.u32 %s221_s12, 4  ;;  %s39_s16 = sshll.u32 %s251_s1, 4  ;;  %s23_s13 = int_to_ptr.vmem [resolvable:$true] %s22_s13  ;;  %s40_s16 = int_to_ptr.hbm [resolvable:$true] %s39_s16 }
   0x4   :  { %s222_s17 = smov 128   ;;  %s223_s18 = smov 8  }
   0x5   :  { %28 = dma.hbm_to_vmem [thread:$0]  %s21_s11, 256, %s23_s13, [#allocation4], %s222_s17, %s222_s17, %s223_s18  }
   0x6   :  { %s224_s19 = smov [#allocation6]  }
   0x7   :  { %s41_s20 = sshll.u32 %s224_s19, 4  ;;  %s42_s20 = int_to_ptr.vmem [resolvable:$true] %s41_s20 }
   0x8   :  { %47 = dma.hbm_to_vmem [thread:$0]  %s40_s16, 256, %s42_s20, [#allocation7], %s222_s17, %s222_s17, %s223_s18  }
   0x9   :  { %215 = dma.done.wait [#allocation4], 256  }
   0xa   :  { %216 = vsyncadd [#allocation4], 4294967040 }
   0xb   :  { %217 = dma.done.wait [#allocation7], 256  }
   0xc   :  { %218 = vsyncadd [#allocation7], 4294967040  ;;  %v69_v0 = vld [vmem:[#allocation3] sm:$0xff]  ;;  %v70_v1 = vld [vmem:[#allocation3 + $0x8] sm:$0xff]  ;;  %s225_s0 = smov [#allocation8]   ;;  %s115_s23 = sshll.u32 %s252_s2, 4  ;;  %s116_s23 = int_to_ptr.hbm [resolvable:$true] %s115_s23 }
   0xd   :  { %135 = vlog2.f32 %v69_v0  ;;  %v79_v2 = vsub.f32 1.0, %v69_v0  ;;  %v80_v3 = vsub.f32 1.0, %v70_v1  ;;  %v71_v15 = vld [vmem:[#allocation6] sm:$0xff]  ;;  %v72_v17 = vld [vmem:[#allocation6 + $0x8] sm:$0xff]  ;;  %s113_s1 = sshll.u32 %s225_s0, 4  ;;  %s114_s1 = int_to_ptr.vmem [resolvable:$true] %s113_s1 }
   0xe   :  { %137 = vlog2.f32 %v70_v1 }
   0xf   :  { %139 = vlog2.f32 %v79_v2 }
  0x10   :  { %141 = vlog2.f32 %v80_v3 }
  0x13   :  { %v136_v4 = vpop.eup %135 }
  0x14   :  { %v138_v5 = vpop.eup %137  ;;  %v74_v6 = vmul.f32 0.6931472, %v136_v4 }
  0x15   :  { %v140_v7 = vpop.eup %139  ;;  %v76_v8 = vmul.f32 0.6931472, %v138_v5 }
  0x16   :  { %v142_v9 = vpop.eup %141  ;;  %v77_v10 = vmax.f32 %v74_v6, -100.0  ;;  %v82_v11 = vmul.f32 0.6931472, %v140_v7 }
  0x17   :  { %v78_v12 = vmax.f32 %v76_v8, -100.0  ;;  %v84_v13 = vmul.f32 0.6931472, %v142_v9 }
  0x18   :  { %v85_v14 = vmax.f32 %v82_v11, -100.0 }
  0x19   :  { %v86_v16 = vmax.f32 %v84_v13, -100.0 }
  0x1a   :  { %v87_v18 = vsub.f32 %v77_v10, %v85_v14 }
  0x1b   :  { %v88_v19 = vsub.f32 %v78_v12, %v86_v16 }
  0x1c   :  { %v89_v20 = vmul.f32 %v87_v18, %v71_v15 }
  0x1d   :  { %v90_v21 = vmul.f32 %v88_v19, %v72_v17 }
  0x1e   :  { %v91_v22 = vadd.f32 %v89_v20, %v85_v14 }
  0x1f   :  { %v92_v23 = vadd.f32 %v90_v21, %v86_v16 }
  0x21   :  { %v94_v24 = vadd.f32 %v92_v23, %v91_v22 }
  0x23   :  { %v101_v25 = vrot.slane %v94_v24, 4 }
  0x25   :  { %v102_v26 = vadd.f32 %v101_v25, %v94_v24 }
  0x27   :  { %v103_v27 = vrot.slane %v102_v26, 2 }
  0x29   :  { %v104_v28 = vadd.f32 %v103_v27, %v102_v26 }
  0x2b   :  { %v105_v29 = vrot.slane %v104_v28, 1 }
  0x2d   :  { %v106_v30 = vadd.f32 %v105_v29, %v104_v28 }
  0x2f   :  { %107 = vst [vmem:[#allocation8] sm:$0x1] %v106_v30 }
  0x30   :  { %118 = dma.vmem_to_hbm [thread:$0]  %s114_s1, 16, %s116_s23, [#allocation5]  }
  0x31   :  { %219 = dma.done.wait [#allocation5], 16  }
  0x32   :  { %220 = vsyncadd [#allocation5], 4294967280 }
  0x33   :  { %123 = vsyncpa [#allocation4], 1 }
  0x34   :  { %124 = vsyncpa [#allocation7], 1 }
  0x35   :  { %125 = vsyncpa [#allocation5], 1 }

</bundles_post_ra>
